<compile_context>
chip_gen: v5e
topology: v5e:2x2
jax: 0.10.0
libtpu: 0.0.40
codegen_flags: <defaults>
</compile_context>

<pallas_src>
import math

import jax
import jax.numpy as jnp
from jax.experimental import pallas as pl
from jax.experimental.pallas import tpu as pltpu


_F = 32        # model_features_number (middle_fc out)
_NC = 5        # num_classes (fc out)
_LANES = 128   # lane-dense packed output width


# ----------------------------------------------------------------------------
# Pallas kernel: GAP -> middle_fc -> fc (Linear, ReLU, Linear), fused per
# batch tile.  x block layout is (tb, HW, C): channels on the lane axis.
# ----------------------------------------------------------------------------
def _head_kernel(x_ref, wmid_ref, bmid_ref, w1_ref, b1_ref, w2_ref, b2_ref,
                 packed_ref):
    # GAP over the HW (sublane) axis with f32 accumulation; the 1/HW scale is
    # folded into wmid by the wrapper, so this equals AdaptiveAvgPool2d+flatten
    # followed by middle_fc.
    gap = jnp.sum(x_ref[...], axis=1, dtype=jnp.float32)                 # (tb, C)

    # middle_fc: Linear(1024 -> 32).  bf16 operands, f32 accumulation (MXU).
    feat = jnp.dot(gap.astype(jnp.bfloat16), wmid_ref[...],
                   preferred_element_type=jnp.float32) + bmid_ref[...]   # (tb, 32)

    # fc: Linear(32 -> 256) -> ReLU -> Linear(256 -> 5)
    h = jnp.dot(feat.astype(jnp.bfloat16), w1_ref[...],
                preferred_element_type=jnp.float32) + b1_ref[...]        # (tb, 256)
    h = jnp.maximum(h, 0.0)
    logits = jnp.dot(h.astype(jnp.bfloat16), w2_ref[...],
                     preferred_element_type=jnp.float32) + b2_ref[...]   # (tb, 5)

    # Lane-dense packed output block: feat in lanes [0,32), logits in [32,37).
    packed_ref[...] = jnp.zeros_like(packed_ref)
    packed_ref[:, 0, 0:_F] = feat
    packed_ref[:, 0, _F:_F + _NC] = logits


def _vmem_limit_bytes():
    """VMEM limit: generous on v5e/v6e (128 MiB physical), tight on v7x (64 MiB)."""
    cap = 64 * 1024 * 1024  # conservative fallback = v7x per-TC physical VMEM
    try:
        cap = int(getattr(pltpu.get_tpu_info(), "vmem_capacity_bytes", cap))
    except Exception:
        pass
    # Leave headroom for Mosaic internal scratch / semaphores.
    return max(32 * 1024 * 1024, min(cap - 16 * 1024 * 1024, 96 * 1024 * 1024))


def pretrained_model_forward(x_nhwc, labels, params):
    """Forward of PretrainedModel (mix=False, concat=False, cam=False).

    Args:
      x_nhwc: encoder feature map, channels-last (B, H, W, C=1024), f32 or bf16.
      labels: int32 (B,)
      params: dict of head parameters (f32; Linear weights stored (in, out)).
    Returns:
      (features (B, 32) f32, out (B, 5) f32, labels, mixed_features_tensor=None)
    """
    B, H, W, C = x_nhwc.shape
    HW = H * W
    # Metadata-only reshape: C stays on the fast (lane) axis -> 2 KiB rows.
    x = x_nhwc.reshape(B, HW, C)

    # Fold the 1/HW GAP scale into middle_fc's weight; matmul weights in bf16.
    w_mid = (params["w_mid"] * (1.0 / HW)).astype(jnp.bfloat16)
    w_fc1 = params["w_fc1"].astype(jnp.bfloat16)
    w_fc2 = params["w_fc2"].astype(jnp.bfloat16)
    b_mid, b_fc1, b_fc2 = params["b_mid"], params["b_fc1"], params["b_fc2"]

    # --- batch tile size.  Per batch element charge: double-buffered input
    # tile + a possible f32 temp from the GAP upcast, against ~60% of the VMEM
    # limit (remainder: resident weights, outputs, Mosaic scratch).
    vmem_limit = _vmem_limit_bytes()
    padded_hw = -(-HW // 16) * 16           # sublane padding (bf16 packs 16 rows)
    padded_c = -(-C // 128) * 128           # lane padding
    per_elem = padded_hw * padded_c * (2 * x.dtype.itemsize + 4)
    tb = max(1, (vmem_limit * 3 // 5) // per_elem)
    tb = min(tb, B)
    if B >= 2:
        # >= 2 grid steps so ("parallel",) can shard across v7x's two
        # TensorCores and the input stream actually pipelines.
        tb = min(tb, pl.cdiv(B, 2))
    grid = (pl.cdiv(B, tb),)
    # TODO(synk): if a single (1, HW, C) tile ever exceeded the VMEM budget
    # (very large spatial maps), an HW-tiled accumulating grid axis is needed.

    def const_spec(shape):
        # Constant block index -> weights stay resident in VMEM across steps.
        return pl.BlockSpec(shape, lambda b: (0, 0))

    # Advisory cost estimate (this head is HBM-bound on x).
    flops = 2 * B * (C * _F + _F * 256 + 256 * _NC) + B * C * HW
    w_bytes = sum(int(a.size) * a.dtype.itemsize
                  for a in (w_mid, b_mid, w_fc1, b_fc1, w_fc2, b_fc2))
    bytes_accessed = B * C * HW * x.dtype.itemsize + w_bytes + B * _LANES * 4
    cost = pl.CostEstimate(flops=flops, transcendentals=0,
                           bytes_accessed=bytes_accessed)

    packed = pl.pallas_call(
        _head_kernel,
        grid=grid,
        in_specs=[
            pl.BlockSpec((tb, HW, C), lambda b: (b, 0, 0)),   # x stream
            const_spec((C, _F)),    const_spec((1, _F)),      # middle_fc
            const_spec((_F, 256)),  const_spec((1, 256)),     # fc[0]
            const_spec((256, _NC)), const_spec((1, _NC)),     # fc[2]
        ],
        out_specs=pl.BlockSpec((tb, 1, _LANES), lambda b: (b, 0, 0)),
        out_shape=jax.ShapeDtypeStruct((B, 1, _LANES), jnp.float32),
        compiler_params=pltpu.CompilerParams(
            dimension_semantics=("parallel",),                # v7x: 2 TCs
            vmem_limit_bytes=vmem_limit,
        ),
        cost_estimate=cost,
    )(x, w_mid, b_mid, w_fc1, b_fc1, w_fc2, b_fc2)

    packed = packed.reshape(B, _LANES)
    feat = packed[:, :_F]
    out = packed[:, _F:_F + _NC]
    mixed_features_tensor = None  # mix=False path
    return feat, out, labels, mixed_features_tensor


# ----------------------------------------------------------------------------
# Deterministic parameter init (mimics nn.Linear / kaiming_uniform).
# Linear weights are stored transposed, i.e. (in_features, out_features).
# ----------------------------------------------------------------------------
def _linear_init(key, fan_in, fan_out):
    kw, kb = jax.random.split(key)
    bound = 1.0 / math.sqrt(fan_in)
    w = jax.random.uniform(kw, (fan_in, fan_out), jnp.float32, -bound, bound)
    b = jax.random.uniform(kb, (1, fan_out), jnp.float32, -bound, bound)
    return w, b


def init_params(key, num_classes=5, model_features_number=32):
    keys = jax.random.split(key, 6)
    w_mid, b_mid = _linear_init(keys[0], 1024, 32)    # middle_fc
    w_fc1, b_fc1 = _linear_init(keys[1], 32, 256)     # fc[0]
    w_fc2, b_fc2 = _linear_init(keys[2], 256, 5)      # fc[2]
    # mus / deltas / sigmas exist in __init__ but are unused in forward.
    kaiming_bound = math.sqrt(6.0 / ((1 + 5.0) * model_features_number))
    mus = jax.random.uniform(keys[3], (1, model_features_number),
                             jnp.float32, -kaiming_bound, kaiming_bound)
    deltas = jax.random.uniform(keys[4], (num_classes, model_features_number),
                                jnp.float32, -kaiming_bound, kaiming_bound)
    sigmas = jax.random.uniform(keys[5], (num_classes, model_features_number),
                                jnp.float32, -kaiming_bound, kaiming_bound)
    return {
        "w_mid": w_mid, "b_mid": b_mid,
        "w_fc1": w_fc1, "b_fc1": b_fc1,
        "w_fc2": w_fc2, "b_fc2": b_fc2,
        "mus": mus, "deltas": deltas, "sigmas": sigmas,
    }


def _reference_forward(x_nhwc, params):
    x = x_nhwc.astype(jnp.float32)
    gap = jnp.mean(x, axis=(1, 2))
    feat = jnp.dot(gap, params["w_mid"]) + params["b_mid"]
    h = jnp.maximum(jnp.dot(feat, params["w_fc1"]) + params["b_fc1"], 0.0)
    out = jnp.dot(h, params["w_fc2"]) + params["b_fc2"]
    return feat, out


if __name__ == "__main__":
    key = jax.random.PRNGKey(0)
    k_x, k_p = jax.random.split(key)

    # Encoder feature map for swin_b at 224x224 input: (B, 7, 7, 1024),
    # channels-last, kept in bf16 (halves HBM bytes of the only large transfer).
    B, H, W, C = 2, 7, 7, 1024
    x = jax.random.normal(k_x, (B, H, W, C), jnp.float32).astype(jnp.bfloat16)
    labels = jnp.array([0, 2], dtype=jnp.int32)
    params = init_params(k_p)

    fwd = jax.jit(lambda xx, ll: pretrained_model_forward(xx, ll, params))
    feat, out, labels_out, mixed = fwd(x, labels)
    jax.block_until_ready((feat, out, labels_out))

    feat_ref, out_ref = _reference_forward(x, params)
    assert feat.shape == (B, 32) and out.shape == (B, 5) and mixed is None
    assert labels_out.shape == labels.shape
    assert jnp.allclose(feat, feat_ref, rtol=2e-2, atol=2e-2), \
        float(jnp.max(jnp.abs(feat - feat_ref)))
    assert jnp.allclose(out, out_ref, rtol=2e-2, atol=2e-2), \
        float(jnp.max(jnp.abs(out - out_ref)))
    print("KERNEL_OK")
</pallas_src>

<mosaic_0001>
module attributes {stable_mosaic.version = 11 : i64} {
  func.func @_head_kernel(%arg0: i32, %arg1: memref<1x49x1024xbf16, #tpu.memory_space<vmem>>, %arg2: memref<1024x32xbf16, #tpu.memory_space<vmem>>, %arg3: memref<1x32xf32, #tpu.memory_space<vmem>>, %arg4: memref<32x256xbf16, #tpu.memory_space<vmem>>, %arg5: memref<1x256xf32, #tpu.memory_space<vmem>>, %arg6: memref<256x5xbf16, #tpu.memory_space<vmem>>, %arg7: memref<1x5xf32, #tpu.memory_space<vmem>>, %arg8: memref<1x1x128xf32, #tpu.memory_space<vmem>>) attributes {dimension_semantics = [#tpu.dimension_semantics<parallel>], iteration_bounds = array<i64: 2>, scalar_prefetch = 0 : i64, scratch_operands = 0 : i64, tpu.core_type = #tpu.core_type<tc>, window_params = [{transform_indices = @transform_0, window_bounds = array<i64: 1, 49, 1024>}, {pipeline_mode = #tpu.pipeline_mode<synchronous>, transform_indices = @transform_1, window_bounds = array<i64: 1024, 32>}, {pipeline_mode = #tpu.pipeline_mode<synchronous>, transform_indices = @transform_2, window_bounds = array<i64: 1, 32>}, {pipeline_mode = #tpu.pipeline_mode<synchronous>, transform_indices = @transform_3, window_bounds = array<i64: 32, 256>}, {pipeline_mode = #tpu.pipeline_mode<synchronous>, transform_indices = @transform_4, window_bounds = array<i64: 1, 256>}, {pipeline_mode = #tpu.pipeline_mode<synchronous>, transform_indices = @transform_5, window_bounds = array<i64: 256, 5>}, {pipeline_mode = #tpu.pipeline_mode<synchronous>, transform_indices = @transform_6, window_bounds = array<i64: 1, 5>}, {transform_indices = @transform_7, window_bounds = array<i64: 1, 1, 128>}]} {
    %c0 = arith.constant 0 : index
    %c0_0 = arith.constant 0 : index
    %c0_1 = arith.constant 0 : index
    %0 = vector.load %arg1[%c0, %c0_0, %c0_1] : memref<1x49x1024xbf16, #tpu.memory_space<vmem>>, vector<1x49x1024xbf16>
    %1 = arith.extf %0 : vector<1x49x1024xbf16> to vector<1x49x1024xf32>
    %cst = arith.constant dense<0.000000e+00> : vector<1x1024xf32>
    %2 = vector.multi_reduction <add>, %1, %cst [1] : vector<1x49x1024xf32> to vector<1x1024xf32>
    %3 = arith.truncf %2 : vector<1x1024xf32> to vector<1x1024xbf16>
    %c0_2 = arith.constant 0 : index
    %c0_3 = arith.constant 0 : index
    %4 = vector.load %arg2[%c0_2, %c0_3] : memref<1024x32xbf16, #tpu.memory_space<vmem>>, vector<1024x32xbf16>
    %cst_4 = arith.constant dense<0.000000e+00> : vector<1x32xf32>
    %5 = tpu.matmul %3, %4, %cst_4 {dimension_numbers = #tpu.dot_dimension_numbers<[1], [0], [0], [1], [0, 0, 1, 1], [], []>} : vector<1x1024xbf16>, vector<1024x32xbf16>, vector<1x32xf32> -> vector<1x32xf32>
    %c0_5 = arith.constant 0 : index
    %c0_6 = arith.constant 0 : index
    %6 = vector.load %arg3[%c0_5, %c0_6] : memref<1x32xf32, #tpu.memory_space<vmem>>, vector<1x32xf32>
    %7 = arith.addf %5, %6 : vector<1x32xf32>
    %8 = arith.truncf %7 : vector<1x32xf32> to vector<1x32xbf16>
    %c0_7 = arith.constant 0 : index
    %c0_8 = arith.constant 0 : index
    %9 = vector.load %arg4[%c0_7, %c0_8] : memref<32x256xbf16, #tpu.memory_space<vmem>>, vector<32x256xbf16>
    %cst_9 = arith.constant dense<0.000000e+00> : vector<1x256xf32>
    %10 = tpu.matmul %8, %9, %cst_9 {dimension_numbers = #tpu.dot_dimension_numbers<[1], [0], [0], [1], [0, 0, 1, 1], [], []>} : vector<1x32xbf16>, vector<32x256xbf16>, vector<1x256xf32> -> vector<1x256xf32>
    %c0_10 = arith.constant 0 : index
    %c0_11 = arith.constant 0 : index
    %11 = vector.load %arg5[%c0_10, %c0_11] : memref<1x256xf32, #tpu.memory_space<vmem>>, vector<1x256xf32>
    %12 = arith.addf %10, %11 : vector<1x256xf32>
    %cst_12 = arith.constant 0.000000e+00 : f32
    %13 = vector.broadcast %cst_12 : f32 to vector<1x256xf32>
    %14 = arith.maximumf %12, %13 : vector<1x256xf32>
    %15 = arith.truncf %14 : vector<1x256xf32> to vector<1x256xbf16>
    %c0_13 = arith.constant 0 : index
    %c0_14 = arith.constant 0 : index
    %16 = vector.load %arg6[%c0_13, %c0_14] : memref<256x5xbf16, #tpu.memory_space<vmem>>, vector<256x5xbf16>
    %cst_15 = arith.constant dense<0.000000e+00> : vector<1x5xf32>
    %17 = tpu.matmul %15, %16, %cst_15 {dimension_numbers = #tpu.dot_dimension_numbers<[1], [0], [0], [1], [0, 0, 1, 1], [], []>} : vector<1x256xbf16>, vector<256x5xbf16>, vector<1x5xf32> -> vector<1x5xf32>
    %c0_16 = arith.constant 0 : index
    %c0_17 = arith.constant 0 : index
    %18 = vector.load %arg7[%c0_16, %c0_17] : memref<1x5xf32, #tpu.memory_space<vmem>>, vector<1x5xf32>
    %19 = arith.addf %17, %18 : vector<1x5xf32>
    %cst_18 = arith.constant 0.000000e+00 : f32
    %20 = vector.broadcast %cst_18 : f32 to vector<1x1x128xf32>
    %c0_19 = arith.constant 0 : index
    %c0_20 = arith.constant 0 : index
    %c0_21 = arith.constant 0 : index
    %21 = vector.load %arg8[%c0_19, %c0_20, %c0_21] : memref<1x1x128xf32, #tpu.memory_space<vmem>>, vector<1x1x128xf32>
    tpu.vector_store %arg8[%c0_19, %c0_20, %c0_21], %20 {strides = array<i32>} : memref<1x1x128xf32, #tpu.memory_space<vmem>>, vector<1x1x128xf32>,
    %c0_22 = arith.constant 0 : index
    %c0_23 = arith.constant 0 : index
    %c0_24 = arith.constant 0 : index
    %22 = vector.load %arg8[%c0_22, %c0_23, %c0_24] : memref<1x1x128xf32, #tpu.memory_space<vmem>>, vector<1x1x32xf32>
    %23 = vector.shape_cast %22 : vector<1x1x32xf32> to vector<1x32xf32>
    %24 = vector.shape_cast %7 : vector<1x32xf32> to vector<1x1x32xf32>
    tpu.vector_store %arg8[%c0_22, %c0_23, %c0_24], %24 {strides = array<i32>} : memref<1x1x128xf32, #tpu.memory_space<vmem>>, vector<1x1x32xf32>,
    %c0_25 = arith.constant 0 : index
    %c0_26 = arith.constant 0 : index
    %c32 = arith.constant 32 : index
    %25 = vector.load %arg8[%c0_25, %c0_26, %c32] : memref<1x1x128xf32, #tpu.memory_space<vmem>>, vector<1x1x5xf32>
    %26 = vector.shape_cast %25 : vector<1x1x5xf32> to vector<1x5xf32>
    %27 = vector.shape_cast %19 : vector<1x5xf32> to vector<1x1x5xf32>
    tpu.vector_store %arg8[%c0_25, %c0_26, %c32], %27 {strides = array<i32>} : memref<1x1x128xf32, #tpu.memory_space<vmem>>, vector<1x1x5xf32>,
    return
  }
  func.func @transform_0(%arg0: i32) -> (i32, i32, i32) {
    %c0_i32 = arith.constant 0 : i32
    %c0_i32_0 = arith.constant 0 : i32
    %c0_i32_1 = arith.constant 0 : i32
    return %arg0, %c0_i32, %c0_i32_0 : i32, i32, i32
  }
  func.func @transform_1(%arg0: i32) -> (i32, i32) {
    %c0_i32 = arith.constant 0 : i32
    %c0_i32_0 = arith.constant 0 : i32
    %c0_i32_1 = arith.constant 0 : i32
    return %c0_i32, %c0_i32_0 : i32, i32
  }
  func.func @transform_2(%arg0: i32) -> (i32, i32) {
    %c0_i32 = arith.constant 0 : i32
    %c0_i32_0 = arith.constant 0 : i32
    %c0_i32_1 = arith.constant 0 : i32
    return %c0_i32, %c0_i32_0 : i32, i32
  }
  func.func @transform_3(%arg0: i32) -> (i32, i32) {
    %c0_i32 = arith.constant 0 : i32
    %c0_i32_0 = arith.constant 0 : i32
    %c0_i32_1 = arith.constant 0 : i32
    return %c0_i32, %c0_i32_0 : i32, i32
  }
  func.func @transform_4(%arg0: i32) -> (i32, i32) {
    %c0_i32 = arith.constant 0 : i32
    %c0_i32_0 = arith.constant 0 : i32
    %c0_i32_1 = arith.constant 0 : i32
    return %c0_i32, %c0_i32_0 : i32, i32
  }
  func.func @transform_5(%arg0: i32) -> (i32, i32) {
    %c0_i32 = arith.constant 0 : i32
    %c0_i32_0 = arith.constant 0 : i32
    %c0_i32_1 = arith.constant 0 : i32
    return %c0_i32, %c0_i32_0 : i32, i32
  }
  func.func @transform_6(%arg0: i32) -> (i32, i32) {
    %c0_i32 = arith.constant 0 : i32
    %c0_i32_0 = arith.constant 0 : i32
    %c0_i32_1 = arith.constant 0 : i32
    return %c0_i32, %c0_i32_0 : i32, i32
  }
  func.func @transform_7(%arg0: i32) -> (i32, i32, i32) {
    %c0_i32 = arith.constant 0 : i32
    %c0_i32_0 = arith.constant 0 : i32
    %c0_i32_1 = arith.constant 0 : i32
    return %arg0, %c0_i32, %c0_i32_0 : i32, i32, i32
  }
}

</mosaic_0001>

<bundles_post_ra>
// kernel: _lambda_.1
= control target key start
LH: loop header
LB: loop body
LE: loop exit
PB: predicated region body
PF: predicated region fallthrough
CT: control target
= control target key end

     0   :  { %s1857_s24 = smov 0   ;;  %s2274_s0 = inlined_call_operand.vmem [shape: bf16[2,49,1024], index: 0, kind: input, shape index: {}]   ;;  %s2275_s1 = inlined_call_operand.vmem [shape: bf16[1024,32], index: 1, kind: input, shape index: {}]   ;;  %s2276_s2 = inlined_call_operand.vmem [shape: f32[1,32], index: 2, kind: input, shape index: {}]   ;;  %s2277_s3 = inlined_call_operand.vmem [shape: bf16[32,256], index: 3, kind: input, shape index: {}]   ;;  %s2278_s4 = inlined_call_operand.vmem [shape: f32[1,256], index: 4, kind: input, shape index: {}]   ;;  %s2279_s5 = inlined_call_operand.vmem [shape: bf16[256,5], index: 5, kind: input, shape index: {}]   ;;  %s2280_s6 = inlined_call_operand.vmem [shape: f32[1,5], index: 6, kind: input, shape index: {}]   ;;  %s2281_s7 = inlined_call_operand.vmem [shape: f32[2,1,128], index: 7, kind: output, shape index: {}]  }
   0x1 LB: > { %s1366_s25 = sadd.s32 4294967295, %s1813_s24   ;;  %p1370_p0 = scmp.ge.s32.totalorder %s1813_s24, 1  ;;  %s1813_s24 = sphi %s1857_s24, %s17_s24  }
   0x2   : > { %p237_p1 = scmp.lt.s32.totalorder %s1813_s24, 3 }
   0x4   : > { %p238_p2 = pnand %p1370_p0, %p237_p1 }
   0x5   : > { %p267_p3 = scmp.lt.s32.totalorder (!%p238_p2), %s1366_s25, 1  ;;  %s1816_s27 = smov (!%p238_p2), 32  }
   0x6   : > { %241 = sbr.rel (%p238_p2) target bundleno = 599 (0x257), region = 48 }
   0xb   : > { %v1719_v0 = vld [vmem:[%s2275_s1 + $0x38] sm:$0xff]  ;;  %v1718_v4 = vld [vmem:[%s2275_s1 + $0x30] sm:$0xff]  ;;  %s2283_s25 = smov (!%p267_p3, %s1366_s25), 1  ;;  %v1717_v8 = vld [vmem:[%s2275_s1 + $0x28] sm:$0xff]  ;;  %vm365_vm0 = vcmask 1040384   ;;  %vm1311_vm1 = vcmask 253952  }
   0xc   : > { %v1727_v1 = vld [vmem:[%s2275_s1 + $0x78] sm:$0xff]  ;;  %986 = vmatpush.bf16.msra.mxu0 %v1719_v0  ;;  %v1726_v5 = vld [vmem:[%s2275_s1 + $0x70] sm:$0xff]  ;;  %v1725_v9 = vld [vmem:[%s2275_s1 + $0x68] sm:$0xff]  ;;  %s1796_s23 = smul.u32 224, %s2283_s25  ;;  %s2209_s8 = scalar_lea.vmem %s2281_s7, %s2283_s25  ;;  %vm1121_vm2 = vcmask 261120   ;;  %vm1317_vm3 = vcmask 295168  }
   0xd   : > { %v1735_v2 = vld [vmem:[%s2275_s1 + $0xb8] sm:$0xff]  ;;  %999 = vmatpush.bf16.msra.mxu1 %v1727_v1  ;;  %v1734_v6 = vld [vmem:[%s2275_s1 + $0xb0] sm:$0xff]  ;;  %v1733_v10 = vld [vmem:[%s2275_s1 + $0xa8] sm:$0xff] }
   0xe   : > { %v1743_v3 = vld [vmem:[%s2275_s1 + $0xf8] sm:$0xff]  ;;  %1012 = vmatpush.bf16.msra.mxu2 %v1735_v2  ;;  %v1742_v7 = vld [vmem:[%s2275_s1 + $0xf0] sm:$0xff]  ;;  %v1741_v11 = vld [vmem:[%s2275_s1 + $0xe8] sm:$0xff]  ;;  %s1913_s13 = scalar_lea.vmem %s2274_s0, %s1796_s23 }
   0xf   : > { %1025 = vmatpush.bf16.msra.mxu3 %v1743_v3  ;;  %v1716_v12 = vld [vmem:[%s2275_s1 + $0x20] sm:$0xff]  ;;  %v1715_v16 = vld [vmem:[%s2275_s1 + $0x18] sm:$0xff]  ;;  %v277_v19 = vld [vmem:[%s1913_s13 + $0x8] sm:$0xff] }
  0x10   : > { %987 = vmatpush.bf16.msra.mxu0 %v1718_v4  ;;  %v1724_v13 = vld [vmem:[%s2275_s1 + $0x60] sm:$0xff]  ;;  %v1723_v17 = vld [vmem:[%s2275_s1 + $0x58] sm:$0xff]  ;;  %v281_v20 = vld [vmem:[%s1913_s13 + $0x28] sm:$0xff]  ;;  %v306_v24 = vunpack.c.l.bf16 %v277_v19  ;;  %v307_v26 = vunpack.c.h.bf16 %v277_v19 }
  0x11   : > { %1000 = vmatpush.bf16.msra.mxu1 %v1726_v5  ;;  %v1732_v14 = vld [vmem:[%s2275_s1 + $0xa0] sm:$0xff]  ;;  %v1731_v18 = vld [vmem:[%s2275_s1 + $0x98] sm:$0xff]  ;;  %v285_v21 = vld [vmem:[%s1913_s13 + $0x48] sm:$0xff]  ;;  %v314_v25 = vunpack.c.l.bf16 %v281_v20  ;;  %v315_v27 = vunpack.c.h.bf16 %v281_v20 }
  0x12   : > { %1013 = vmatpush.bf16.msra.mxu2 %v1734_v6  ;;  %v1740_v15 = vld [vmem:[%s2275_s1 + $0xe0] sm:$0xff]  ;;  %v289_v22 = vld [vmem:[%s1913_s13 + $0x68] sm:$0xff]  ;;  %v1739_v28 = vld [vmem:[%s2275_s1 + $0xd8] sm:$0xff]  ;;  %v322_v31 = vunpack.c.l.bf16 %v285_v21  ;;  %v323_v38 = vunpack.c.h.bf16 %v285_v21 }
  0x13   : > { %1026 = vmatpush.bf16.msra.mxu3 %v1742_v7  ;;  %v1935_v23 = vld [vmem:[%s1913_s13 + $0x88] sm:$0xff]  ;;  %v330_v32 = vunpack.c.l.bf16 %v289_v22  ;;  %v1714_v33 = vld [vmem:[%s2275_s1 + $0x10] sm:$0xff]  ;;  %v387_v37 = vadd.f32 %v314_v25, %v306_v24  ;;  %v276_v40 = vld [vmem:[%s1913_s13] sm:$0xff]  ;;  %v331_v43 = vunpack.c.h.bf16 %v289_v22  ;;  %v400_v45 = vadd.f32 %v315_v27, %v307_v26 }
  0x14   : > { %988 = vmatpush.bf16.msra.mxu0 %v1717_v8  ;;  %v1941_v29 = vld [vmem:[%s1913_s13 + $0xa8] sm:$0xff]  ;;  %v1722_v34 = vld [vmem:[%s2275_s1 + $0x50] sm:$0xff]  ;;  %v338_v35 = vunpack.c.l.bf16 %v1935_v23  ;;  %v280_v41 = vld [vmem:[%s1913_s13 + $0x20] sm:$0xff]  ;;  %v339_v44 = vunpack.c.h.bf16 %v1935_v23  ;;  %v304_v50 = vunpack.c.l.bf16 %v276_v40  ;;  %v305_v2 = vunpack.c.h.bf16 %v276_v40 }
  0x15   : > { %1001 = vmatpush.bf16.msra.mxu1 %v1725_v9  ;;  %v301_v30 = vld [vmem:[%s1913_s13 + $0xc8] sm:$0x11]  ;;  %v346_v39 = vunpack.c.l.bf16 %v1941_v29  ;;  %v1955_v42 = vld [vmem:[%s1913_s13 + $0x40] sm:$0xff]  ;;  %v388_v46 = vadd.f32 %v387_v37, %v322_v31  ;;  %v312_v51 = vunpack.c.l.bf16 %v280_v41  ;;  %v1730_v53 = vld [vmem:[%s2275_s1 + $0x90] sm:$0xff]  ;;  %v347_v59 = vunpack.c.h.bf16 %v1941_v29 }
  0x16   : > { %1014 = vmatpush.bf16.msra.mxu2 %v1733_v10  ;;  %v354_v36 = vunpack.c.l.bf16 %v301_v30  ;;  %v1959_v47 = vld [vmem:[%s1913_s13 + $0x60] sm:$0xff]  ;;  %v355_v52 = vunpack.c.h.bf16 %v301_v30  ;;  %v1738_v54 = vld [vmem:[%s2275_s1 + $0xd0] sm:$0xff]  ;;  %v320_v57 = vunpack.c.l.bf16 %v1955_v42  ;;  %v401_v63 = vadd.f32 %v400_v45, %v323_v38  ;;  %v1713_v4 = vld [vmem:[%s2275_s1 + $0x8] sm:$0xff] }
  0x17   : > { %1027 = vmatpush.bf16.msra.mxu3 %v1741_v11  ;;  %v1962_v48 = vld [vmem:[%s1913_s13 + $0x80] sm:$0xff]  ;;  %v328_v58 = vunpack.c.l.bf16 %v1959_v47  ;;  %v389_v60 = vadd.f32 %v388_v46, %v330_v32  ;;  %v360_v62 = vadd.f32 %v312_v51, %v304_v50  ;;  %v313_v3 = vunpack.c.h.bf16 %v280_v41  ;;  %v1721_v5 = vld [vmem:[%s2275_s1 + $0x48] sm:$0xff]  ;;  %v2000_v21 = vld [vmem:[%s1913_s13 + $0x30] sm:$0xff] }
  0x18   : > { %989 = vmatpush.bf16.msra.mxu0 %v1716_v12  ;;  %v1965_v49 = vld [vmem:[%s1913_s13 + $0xa0] sm:$0xff]  ;;  %v392_v55 = vsel %vm365_vm0, %v354_v36, 0.0  ;;  %v336_v0 = vunpack.c.l.bf16 %v1962_v48  ;;  %v402_v8 = vadd.f32 %v401_v63, %v331_v43  ;;  %v405_v9 = vsel %vm365_vm0, %v355_v52, 0.0  ;;  %v1729_v10 = vld [vmem:[%s2275_s1 + $0x88] sm:$0xff]  ;;  %v2003_v22 = vld [vmem:[%s1913_s13 + $0x50] sm:$0xff] }
  0x19   : > { %1002 = vmatpush.bf16.msra.mxu1 %v1724_v13  ;;  %v300_v56 = vld [vmem:[%s1913_s13 + $0xc0] sm:$0x11]  ;;  %v344_v1 = vunpack.c.l.bf16 %v1965_v49  ;;  %v390_v6 = vadd.f32 %v389_v60, %v338_v35  ;;  %v361_v7 = vadd.f32 %v360_v62, %v320_v57  ;;  %v1737_v11 = vld [vmem:[%s2275_s1 + $0xc8] sm:$0xff]  ;;  %v321_v13 = vunpack.c.h.bf16 %v1955_v42  ;;  %v2007_v24 = vld [vmem:[%s1913_s13 + $0x70] sm:$0xff] }
  0x1a   : > { %1015 = vmatpush.bf16.msra.mxu2 %v1732_v14  ;;  %v352_v61 = vunpack.c.l.bf16 %v300_v56  ;;  %v329_v14 = vunpack.c.h.bf16 %v1959_v47  ;;  %v403_v19 = vadd.f32 %v402_v8, %v339_v44  ;;  %v374_v20 = vadd.f32 %v313_v3, %v305_v2  ;;  %v1720_v29 = vld [vmem:[%s2275_s1 + $0x40] sm:$0xff]  ;;  %v1751_v42 = vld [vmem:[%s2275_s1 + $0x138] sm:$0xff]  ;;  %v2040_v47 = vld [vmem:[%s1913_s13 + $0xb0] sm:$0xff] }
  0x1b   : > { %1028 = vmatpush.bf16.msra.mxu3 %v1740_v15  ;;  %v353_v15 = vunpack.c.h.bf16 %v300_v56  ;;  %v337_v23 = vunpack.c.h.bf16 %v1962_v48  ;;  %v316_v26 = vunpack.c.l.bf16 %v2000_v21  ;;  %v324_v27 = vunpack.c.l.bf16 %v2003_v22  ;;  %v1728_v35 = vld [vmem:[%s2275_s1 + $0x80] sm:$0xff]  ;;  %v1759_v43 = vld [vmem:[%s2275_s1 + $0x178] sm:$0xff]  ;;  %v1750_v63 = vld [vmem:[%s2275_s1 + $0x130] sm:$0xff] }
  0x1c   : > { %990 = vmatpush.bf16.msra.mxu0 %v1715_v16  ;;  %v366_v12 = vsel %vm365_vm0, %v352_v61, 0.0  ;;  %v1997_v16 = vld [vmem:[%s1913_s13 + $0x10] sm:$0xff]  ;;  %v404_v32 = vadd.f32 %v403_v19, %v347_v59  ;;  %v1736_v36 = vld [vmem:[%s2275_s1 + $0xc0] sm:$0xff]  ;;  %v375_v37 = vadd.f32 %v374_v20, %v321_v13  ;;  %v332_v40 = vunpack.c.l.bf16 %v2007_v24  ;;  %v1775_v50 = vld [vmem:[%s2275_s1 + $0x1f8] sm:$0xff] }
  0x1d   : > { %1003 = vmatpush.bf16.msra.mxu1 %v1723_v17  ;;  %v391_v17 = vadd.f32 %v390_v6, %v346_v39  ;;  %v308_v25 = vunpack.c.l.bf16 %v1997_v16  ;;  %v379_v38 = vsel %vm365_vm0, %v353_v15, 0.0  ;;  %v2030_v39 = vld [vmem:[%s1913_s13 + $0xd0] sm:$0x11]  ;;  %v348_v60 = vunpack.c.l.bf16 %v2040_v47  ;;  %v2070_v15 = vld [vmem:[%s1913_s13 + $0x18] sm:$0xff] }
  0x1e   : > { %1016 = vmatpush.bf16.msra.mxu2 %v1731_v18  ;;  %v362_v18 = vadd.f32 %v361_v7, %v328_v58  ;;  %v406_v46 = vadd.f32 %v405_v9, %v404_v32  ;;  %v356_v48 = vunpack.c.l.bf16 %v2030_v39  ;;  %v376_v51 = vadd.f32 %v375_v37, %v329_v14  ;;  %v1774_v6 = vld [vmem:[%s2275_s1 + $0x1f0] sm:$0xff] }
  0x1f   : > { %1029 = vmatpush.bf16.msra.mxu3 %v1739_v28  ;;  %v1712_v28 = vld [vmem:[%s2275_s1] sm:$0xff]  ;;  %v393_v30 = vadd.f32 %v392_v55, %v391_v17  ;;  %v413_v41 = vadd.f32 %v316_v26, %v308_v25  ;;  %v317_v58 = vunpack.c.h.bf16 %v2000_v21  ;;  %v333_v9 = vunpack.c.h.bf16 %v2007_v24 }
  0x20   : > { %991 = vmatpush.bf16.msra.mxu0 %v1714_v33  ;;  %v363_v31 = vadd.f32 %v362_v18, %v336_v0  ;;  %v345_v33 = vunpack.c.h.bf16 %v1965_v49  ;;  %v1767_v49 = vld [vmem:[%s2275_s1 + $0x1b8] sm:$0xff]  ;;  %v407_v57 = vrot.slane %v406_v46, 4  ;;  %v377_v59 = vadd.f32 %v376_v51, %v337_v23  ;;  %v1758_v0 = vld [vmem:[%s2275_s1 + $0x170] sm:$0xff]  ;;  %v1757_v23 = vld [vmem:[%s2275_s1 + $0x168] sm:$0xff] }
  0x21   : > { %1004 = vmatpush.bf16.msra.mxu1 %v1722_v34  ;;  %v2020_v34 = vld [vmem:[%s1913_s13 + $0x90] sm:$0xff]  ;;  %v394_v44 = vrot.slane %v393_v30, 4  ;;  %v418_v62 = vsel %vm365_vm0, %v356_v48, 0.0  ;;  %v349_v19 = vunpack.c.h.bf16 %v2040_v47  ;;  %v357_v20 = vunpack.c.h.bf16 %v2030_v39  ;;  %v2102_v47 = vld [vmem:[%s1913_s13 + $0x98] sm:$0xff] }
  0x22   : > { %1017 = vmatpush.bf16.msra.mxu2 %v1730_v53  ;;  %v364_v45 = vadd.f32 %v363_v31, %v344_v1  ;;  %v340_v52 = vunpack.c.l.bf16 %v2020_v34  ;;  %v414_v53 = vadd.f32 %v413_v41, %v324_v27  ;;  %v408_v3 = vadd.f32 %v407_v57, %v406_v46  ;;  %v2084_v27 = vld [vmem:[%s1913_s13 + $0x58] sm:$0xff] }
  0x23   : > { %1030 = vmatpush.bf16.msra.mxu3 %v1738_v54  ;;  %v309_v54 = vunpack.c.h.bf16 %v1997_v16  ;;  %v395_v55 = vadd.f32 %v394_v44, %v393_v30  ;;  %v378_v7 = vadd.f32 %v377_v59, %v345_v33  ;;  %v2073_v16 = vld [vmem:[%s1913_s13 + $0x38] sm:$0xff]  ;;  %v310_v32 = vunpack.c.l.bf16 %v2070_v15 }
  0x24   : > { %992 = vmatpush.bf16.msra.mxu0 %v1713_v4  ;;  %v367_v56 = vadd.f32 %v366_v12, %v364_v45  ;;  %v415_v61 = vadd.f32 %v414_v53, %v332_v40  ;;  %v325_v4 = vunpack.c.h.bf16 %v2003_v22  ;;  %v409_v13 = vrot.slane %v408_v3, 2  ;;  %v1749_v22 = vld [vmem:[%s2275_s1 + $0x128] sm:$0xff]  ;;  %v1748_v45 = vld [vmem:[%s2275_s1 + $0x120] sm:$0xff] }
  0x25   : > { %1005 = vmatpush.bf16.msra.mxu1 %v1721_v5  ;;  %v396_v1 = vrot.slane %v395_v55, 2  ;;  %v1766_v5 = vld [vmem:[%s2275_s1 + $0x1b0] sm:$0xff]  ;;  %v426_v14 = vadd.f32 %v317_v58, %v309_v54  ;;  %v380_v17 = vadd.f32 %v379_v38, %v378_v7  ;;  %v318_v33 = vunpack.c.l.bf16 %v2073_v16  ;;  %v2095_v38 = vld [vmem:[%s1913_s13 + $0x78] sm:$0xff] }
  0x26   : > { %1018 = vmatpush.bf16.msra.mxu2 %v1729_v10  ;;  %v368_v2 = vrot.slane %v367_v56, 4  ;;  %v416_v8 = vadd.f32 %v415_v61, %v340_v52  ;;  %v341_v10 = vunpack.c.h.bf16 %v2020_v34  ;;  %v410_v25 = vadd.f32 %v409_v13, %v408_v3  ;;  %v2116_v58 = vld [vmem:[%s1913_s13 + $0xd8] sm:$0x11] }
  0x27   : > { %1031 = vmatpush.bf16.msra.mxu3 %v1737_v11  ;;  %v397_v11 = vadd.f32 %v396_v1, %v395_v55  ;;  %v427_v26 = vadd.f32 %v426_v14, %v325_v4  ;;  %v381_v30 = vrot.slane %v380_v17, 4  ;;  %v326_v41 = vunpack.c.l.bf16 %v2084_v27  ;;  %v1755_v7 = vld [vmem:[%s2275_s1 + $0x158] sm:$0xff] }
  0x28   : > { %993 = vmatpush.bf16.msra.mxu0 %v1712_v28  ;;  %v369_v12 = vadd.f32 %v368_v2, %v367_v56  ;;  %v417_v18 = vadd.f32 %v416_v8, %v348_v60  ;;  %v1765_v28 = vld [vmem:[%s2275_s1 + $0x1a8] sm:$0xff]  ;;  %v431_v52 = vsel %vm365_vm0, %v357_v20, 0.0  ;;  %v334_v53 = vunpack.c.l.bf16 %v2095_v38  ;;  %v1772_v56 = vld [vmem:[%s2275_s1 + $0x1e0] sm:$0xff]  ;;  %v1747_v2 = vld [vmem:[%s2275_s1 + $0x118] sm:$0xff] }
  0x29   : > { %1006 = vmatpush.bf16.msra.mxu1 %v1720_v29  ;;  %v398_v21 = vrot.slane %v397_v11, 1  ;;  %v1773_v29 = vld [vmem:[%s2275_s1 + $0x1e8] sm:$0xff]  ;;  %v428_v37 = vadd.f32 %v427_v26, %v333_v9  ;;  %v382_v39 = vadd.f32 %v381_v30, %v380_v17  ;;  %v439_v59 = vadd.f32 %v318_v33, %v310_v32  ;;  %v1763_v8 = vld [vmem:[%s2275_s1 + $0x198] sm:$0xff] }
  0x2a   : > { %1019 = vmatpush.bf16.msra.mxu2 %v1728_v35  ;;  %v370_v24 = vrot.slane %v369_v12, 2  ;;  %v419_v31 = vadd.f32 %v418_v62, %v417_v18  ;;  %v2119_v62 = vld [vmem:[%s1913_s13 + $0xb8] sm:$0xff]  ;;  %v358_v9 = vunpack.c.l.bf16 %v2116_v58  ;;  %v335_v17 = vunpack.c.h.bf16 %v2095_v38  ;;  %v1753_v38 = vld [vmem:[%s2275_s1 + $0x148] sm:$0xff] }
  0x2b   : > { %1032 = vmatpush.bf16.msra.mxu3 %v1736_v36  ;;  %v399_v34 = vadd.f32 %v398_v21, %v397_v11  ;;  %v411_v36 = vrot.slane %v410_v25, 1  ;;  %v429_v46 = vadd.f32 %v428_v37, %v341_v10  ;;  %v383_v48 = vrot.slane %v382_v39, 2  ;;  %v1771_v11 = vld [vmem:[%s2275_s1 + $0x1d8] sm:$0xff] }
  0x2c   : > { %1038 = vmatpush.bf16.msrb.mxu0 %v1751_v42  ;;  %v371_v35 = vadd.f32 %v370_v24, %v369_v12  ;;  %v420_v40 = vrot.slane %v419_v31, 4  ;;  %v440_v4 = vadd.f32 %v439_v59, %v326_v41  ;;  %v327_v10 = vunpack.c.h.bf16 %v2084_v27  ;;  %v1762_v24 = vld [vmem:[%s2275_s1 + $0x190] sm:$0xff]  ;;  %v1769_v41 = vld [vmem:[%s2275_s1 + $0x1c8] sm:$0xff] }
  0x2d   : > { %1051 = vmatpush.bf16.msrb.mxu1 %v1759_v43  ;;  %v467_v42 = vpack.c.bf16 %v399_v34, %v399_v34  ;;  %v412_v44 = vadd.f32 %v411_v36, %v410_v25  ;;  %v430_v57 = vadd.f32 %v429_v46, %v349_v19  ;;  %v384_v60 = vadd.f32 %v383_v48, %v382_v39  ;;  %v1746_v19 = vld [vmem:[%s2275_s1 + $0x110] sm:$0xff]  ;;  %v1761_v39 = vld [vmem:[%s2275_s1 + $0x188] sm:$0xff] }
  0x2e   : > { %1064 = vmatpush.bf16.msrb.mxu2 %v1767_v49  ;;  %v372_v43 = vrot.slane %v371_v35, 1  ;;  %v1756_v49 = vld [vmem:[%s2275_s1 + $0x160] sm:$0xff]  ;;  %v421_v51 = vadd.f32 %v420_v40, %v419_v31  ;;  %v350_v13 = vunpack.c.l.bf16 %v2119_v62  ;;  %v441_v14 = vadd.f32 %v440_v4, %v334_v53  ;;  %v1638_v4 = vld [vmem:[%s2277_s3 + $0x10] sm:$0xf] }
  0x2f   : > { %1077 = vmatpush.bf16.msrb.mxu3 %v1775_v50  ;;  %v1764_v50 = vld [vmem:[%s2275_s1 + $0x1a0] sm:$0xff]  ;;  %1020 = vmatmul.bf16.vlgmr.msra.gmra.mxu2 %v467_v42  ;;  %v468_v55 = vpack.c.bf16 %v412_v44, %v412_v44  ;;  %v432_v3 = vadd.f32 %v431_v52, %v430_v57  ;;  %v444_v25 = vsel %vm365_vm0, %v358_v9, 0.0  ;;  %v343_v26 = vunpack.c.h.bf16 %v2102_v47 }
  0x30   : > { %1039 = vmatpush.bf16.msrb.mxu0 %v1750_v63  ;;  %v373_v54 = vadd.f32 %v372_v43, %v371_v35  ;;  %v422_v61 = vrot.slane %v421_v51, 2  ;;  %v342_v63 = vunpack.c.l.bf16 %v2102_v47  ;;  %v359_v31 = vunpack.c.h.bf16 %v2116_v58  ;;  %v1745_v35 = vld [vmem:[%s2275_s1 + $0x108] sm:$0xff]  ;;  %v1744_v47 = vld [vmem:[%s2275_s1 + $0x100] sm:$0xff] }
  0x31   : > { %1052 = vmatpush.bf16.msrb.mxu1 %v1758_v0  ;;  %v311_v0 = vunpack.c.h.bf16 %v2070_v15  ;;  %1033 = vmatmul.bf16.vlgmr.msra.gmra.mxu3 %v468_v55  ;;  %v433_v12 = vrot.slane %v432_v3, 4  ;;  %v351_v33 = vunpack.c.h.bf16 %v2119_v62  ;;  %v1768_v52 = vld [vmem:[%s2275_s1 + $0x1c0] sm:$0xff] }
  0x32   : > { %1065 = vmatpush.bf16.msrb.mxu2 %v1766_v5  ;;  %v465_v1 = vpack.c.bf16 %v373_v54, %v373_v54  ;;  %v319_v5 = vunpack.c.h.bf16 %v2073_v16  ;;  %v423_v16 = vadd.f32 %v422_v61, %v421_v51  ;;  %v442_v21 = vadd.f32 %v441_v14, %v342_v63 }
  0x33   : > { %1078 = vmatpush.bf16.msrb.mxu3 %v1774_v6  ;;  %v385_v6 = vrot.slane %v384_v60, 1  ;;  %v434_v20 = vadd.f32 %v433_v12, %v432_v3  ;;  %v457_v43 = vsel %vm365_vm0, %v359_v31, 0.0 }
  0x34   : > { %1040 = vmatpush.bf16.msrb.mxu0 %v1749_v22  ;;  %v452_v18 = vadd.f32 %v319_v5, %v311_v0  ;;  %v443_v30 = vadd.f32 %v442_v21, %v350_v13  ;;  %v424_v32 = vrot.slane %v423_v16, 1  ;;  %v1779_v5 = vld [vmem:[%s2277_s3 + $0x14] sm:$0xf0]  ;;  %v601_v21 = vld [vmem:[%s2276_s2] sm:$0x1] }
  0x35   : > { %1053 = vmatpush.bf16.msrb.mxu1 %v1757_v23  ;;  %994 = vmatmul.bf16.vlgmr.msra.gmra.mxu0 %v465_v1  ;;  %v386_v15 = vadd.f32 %v385_v6, %v384_v60  ;;  %v1754_v23 = vld [vmem:[%s2275_s1 + $0x150] sm:$0xff] }
  0x36   : > { %1066 = vmatpush.bf16.msrb.mxu2 %v1765_v28  ;;  %v453_v27 = vadd.f32 %v452_v18, %v327_v10  ;;  %v1770_v28 = vld [vmem:[%s2275_s1 + $0x1d0] sm:$0xff]  ;;  %v445_v37 = vadd.f32 %v444_v25, %v443_v30  ;;  %v425_v44 = vadd.f32 %v424_v32, %v423_v16  ;;  %v1630_v10 = vld [vmem:[%s2277_s3] sm:$0xf]  ;;  %v1632_v16 = vld [vmem:[%s2277_s3 + $0x8] sm:$0xf0] }
  0x37   : > { %1079 = vmatpush.bf16.msrb.mxu3 %v1773_v29  ;;  %v466_v22 = vpack.c.bf16 %v386_v15, %v386_v15  ;;  %v435_v29 = vrot.slane %v434_v20, 2  ;;  %v1778_v6 = vld [vmem:[%s2277_s3 + $0x14] sm:$0xf]  ;;  %v1776_v15 = vld [vmem:[%s2277_s3 + $0x4] sm:$0xf]  ;;  %v1785_v32 = vld [vmem:[%s2279_s5 + $0x28] sm:$0xff] }
  0x38   : > { %1041 = vmatpush.bf16.msrb.mxu0 %v1748_v45  ;;  %v454_v34 = vadd.f32 %v453_v27, %v335_v17  ;;  %v446_v42 = vrot.slane %v445_v37, 4  ;;  %v469_v54 = vpack.c.bf16 %v425_v44, %v425_v44  ;;  %v1635_v17 = vor.u32 %v1776_v15, %v1632_v16  ;;  %v1786_v27 = vld [vmem:[%s2279_s5 + $0x30] sm:$0xff] }
  0x39   : > { %1054 = vmatpush.bf16.msrb.mxu1 %v1756_v49  ;;  %v436_v36 = vadd.f32 %v435_v29, %v434_v20  ;;  %v1752_v49 = vld [vmem:[%s2275_s1 + $0x140] sm:$0xff]  ;;  %v1815_v20 = vmov 0.0   ;;  %v1782_v44 = vld [vmem:[%s2279_s5 + $0x10] sm:$0xff] }
  0x3a   : > { %1067 = vmatpush.bf16.msrb.mxu2 %v1764_v50  ;;  %1007 = vmatmul.bf16.vlgmr.msra.gmra.mxu1 %v466_v22  ;;  %v455_v40 = vadd.f32 %v454_v34, %v343_v26  ;;  %v447_v48 = vadd.f32 %v446_v42, %v445_v37  ;;  %v1760_v50 = vld [vmem:[%s2275_s1 + $0x180] sm:$0xff]  ;;  %1310 = vst [vmem:[%s2209_s8] sm:$0x1] %v1815_v20 }
  0x3b   : > { %1080 = vmatpush.bf16.msrb.mxu3 %v1772_v56  ;;  %v437_v45 = vrot.slane %v436_v36, 1  ;;  %v1792_v37 = vld [vmem:[%s2279_s5 + $0x60] sm:$0xff] }
  0x3c   : > { %1042 = vmatpush.bf16.msrb.mxu0 %v1747_v2  ;;  %v456_v46 = vadd.f32 %v455_v40, %v351_v33  ;;  %v448_v53 = vrot.slane %v447_v48, 2  ;;  %v1793_v33 = vld [vmem:[%s2279_s5 + $0x68] sm:$0xff]  ;;  %v1783_v40 = vld [vmem:[%s2279_s5 + $0x18] sm:$0xff] }
  0x3d   : > { %1055 = vmatpush.bf16.msrb.mxu1 %v1755_v7  ;;  %v438_v55 = vadd.f32 %v437_v45, %v436_v36  ;;  %v1639_v7 = vor.u32 %v1779_v5, %v1638_v4  ;;  %v1784_v36 = vld [vmem:[%s2279_s5 + $0x20] sm:$0xff]  ;;  %v1790_v45 = vld [vmem:[%s2279_s5 + $0x50] sm:$0xff] }
  0x3e   : > { %1068 = vmatpush.bf16.msrb.mxu2 %v1763_v8  ;;  %v458_v51 = vadd.f32 %v457_v43, %v456_v46  ;;  %v449_v57 = vadd.f32 %v448_v53, %v447_v48  ;;  %v1640_v8 = vld [vmem:[%s2277_s3 + $0x18] sm:$0xf0] }
  0x3f   : > { %1081 = vmatpush.bf16.msrb.mxu3 %v1771_v11  ;;  %v470_v60 = vpack.c.bf16 %v438_v55, %v438_v55  ;;  %v1643_v9 = vor.u32 %v1778_v6, %v1640_v8  ;;  %v1777_v11 = vld [vmem:[%s2277_s3 + $0x4] sm:$0xf0]  ;;  %v1187_v8 = vld [vmem:[%s2280_s6] sm:$0x1] }
  0x40   : > { %1043 = vmatpush.bf16.msrb.mxu0 %v1746_v19  ;;  %v459_v56 = vrot.slane %v458_v51, 4  ;;  %v450_v59 = vrot.slane %v449_v57, 1  ;;  %v1631_v12 = vor.u32 %v1777_v11, %v1630_v10  ;;  %v1781_v55 = vld [vmem:[%s2279_s5 + $0x8] sm:$0xff] }
  0x41   : > { %1056 = vmatpush.bf16.msrb.mxu1 %v1754_v23  ;;  %v1787_v23 = vld [vmem:[%s2279_s5 + $0x38] sm:$0xff] }
  0x42   : > { %1069 = vmatpush.bf16.msrb.mxu2 %v1762_v24  ;;  %v460_v58 = vadd.f32 %v459_v56, %v458_v51  ;;  %v451_v62 = vadd.f32 %v450_v59, %v449_v57  ;;  %v1795_v24 = vld [vmem:[%s2279_s5 + $0x78] sm:$0xff]  ;;  %v1789_v56 = vld [vmem:[%s2279_s5 + $0x48] sm:$0xff]  ;;  %v1780_v57 = vld [vmem:[%s2279_s5] sm:$0xff] }
  0x43   : > { %1082 = vmatpush.bf16.msrb.mxu3 %v1770_v28  ;;  %v1794_v28 = vld [vmem:[%s2279_s5 + $0x70] sm:$0xff]  ;;  %v1095_v59 = vld [vmem:[%s2278_s4] sm:$0x3] }
  0x44   : > { %1044 = vmatpush.bf16.msrb.mxu0 %v1745_v35  ;;  %v461_v61 = vrot.slane %v460_v58, 2  ;;  %v471_v0 = vpack.c.bf16 %v451_v62, %v451_v62 }
  0x45   : > { %1057 = vmatpush.bf16.msrb.mxu1 %v1753_v38 }
  0x46   : > { %1070 = vmatpush.bf16.msrb.mxu2 %v1761_v39  ;;  %v462_v63 = vadd.f32 %v461_v61, %v460_v58  ;;  %v1788_v58 = vld [vmem:[%s2279_s5 + $0x40] sm:$0xff]  ;;  %v1118_v61 = vperm.slane %v1095_v59, 1 }
  0x47   : > { %1083 = vmatpush.bf16.msrb.mxu3 %v1769_v41  ;;  %v1791_v41 = vld [vmem:[%s2279_s5 + $0x58] sm:$0xff] }
  0x48   : > { %1045 = vmatpush.bf16.msrb.mxu0 %v1744_v47  ;;  %v463_v1 = vrot.slane %v462_v63, 1 }
  0x49   : > { %1058 = vmatpush.bf16.msrb.mxu1 %v1752_v49 }
  0x4a   : > { %1071 = vmatpush.bf16.msrb.mxu2 %v1760_v50  ;;  %v464_v2 = vadd.f32 %v463_v1, %v462_v63 }
  0x4b   : > { %1084 = vmatpush.bf16.msrb.mxu3 %v1768_v52  ;;  %1046 = vmatmul.bf16.vlgmr.msrb.gmra.mxu0 %v469_v54 }
  0x4c   : > { %1059 = vmatmul.bf16.vlgmr.msrb.gmra.mxu1 %v470_v60  ;;  %v472_v3 = vpack.c.bf16 %v464_v2, %v464_v2  ;;  %1131 = vmatpush.bf16.msra.mxu0 %v1639_v7  ;;  %v1117_v60 = vperm.slane %v1095_v59, 0 }
  0x4d   : > { %1072 = vmatmul.bf16.vlgmr.msrb.gmra.mxu2 %v471_v0  ;;  %1144 = vmatpush.bf16.msra.mxu1 %v1643_v9 }
  0x4e   : > { %1085 = vmatmul.bf16.vlgmr.msrb.gmra.mxu3 %v472_v3  ;;  %1284 = vmatpush.bf16.msra.mxu2 %v1787_v23 }
  0x4f   : > { %1297 = vmatpush.bf16.msra.mxu3 %v1795_v24 }
  0x50   : > { %1132 = vmatpush.bf16.msra.mxu0 %v1631_v12 }
  0x51   : > { %1145 = vmatpush.bf16.msra.mxu1 %v1635_v17 }
  0x52   : > { %1285 = vmatpush.bf16.msra.mxu2 %v1786_v27 }
  0x53   : > { %1298 = vmatpush.bf16.msra.mxu3 %v1794_v28 }
  0x56   : > { %1286 = vmatpush.bf16.msra.mxu2 %v1785_v32 }
  0x57   : > { %1299 = vmatpush.bf16.msra.mxu3 %v1793_v33 }
  0x5a   : > { %1287 = vmatpush.bf16.msra.mxu2 %v1784_v36 }
  0x5b   : > { %1300 = vmatpush.bf16.msra.mxu3 %v1792_v37 }
  0x5e   : > { %1288 = vmatpush.bf16.msra.mxu2 %v1783_v40 }
  0x5f   : > { %1301 = vmatpush.bf16.msra.mxu3 %v1791_v41 }
  0x62   : > { %1289 = vmatpush.bf16.msra.mxu2 %v1782_v44 }
  0x63   : > { %1302 = vmatpush.bf16.msra.mxu3 %v1790_v45 }
  0x66   : > { %1290 = vmatpush.bf16.msra.mxu2 %v1781_v55 }
  0x67   : > { %1303 = vmatpush.bf16.msra.mxu3 %v1789_v56 }
  0x6a   : > { %1291 = vmatpush.bf16.msra.mxu2 %v1780_v57 }
  0x6b   : > { %1304 = vmatpush.bf16.msra.mxu3 %v1788_v58 }
  0xb2   : > { %v995_v13 = vpop.f32.mrf.mxu0  ;;  %v1021_v14 = vpop.f32.mrf.mxu2 }
  0xb3   : > { %v996_v25 = vadd.f32 %v995_v13, %v601_v21 }
  0xb4   : > { %v1034_v18 = vpop.f32.mrf.mxu3 }
  0xb7   : > { %v1008_v19 = vpop.f32.mrf.mxu1 }
  0xb8   : > { %v1009_v31 = vadd.f32 %v1008_v19, %v996_v25 }
  0xba   : > { %v997_v22 = vpop.f32.mrf.mxu0  ;;  %v1023_v26 = vpop.f32.mrf.mxu2  ;;  %v1022_v35 = vadd.f32 %v1021_v14, %v1009_v31 }
  0xbc   : > { %v1036_v29 = vpop.f32.mrf.mxu3  ;;  %v1035_v39 = vadd.f32 %v1034_v18, %v1022_v35 }
  0xbf   : > { %v1010_v30 = vpop.f32.mrf.mxu1 }
  0xc8   : > { %v1047_v34 = vpop.f32.mrf.mxu0 }
  0xc9   : > { %v1060_v38 = vpop.f32.mrf.mxu1  ;;  %v1048_v42 = vadd.f32 %v1047_v34, %v1035_v39 }
  0xcb   : > { %v1061_v46 = vadd.f32 %v1060_v38, %v1048_v42 }
  0xd0   : > { %v1049_v43 = vpop.f32.mrf.mxu0  ;;  %v1073_v47 = vpop.f32.mrf.mxu2 }
  0xd1   : > { %v1062_v48 = vpop.f32.mrf.mxu1  ;;  %v1074_v49 = vadd.f32 %v1073_v47, %v1061_v46  ;;  %v1086_v50 = vpop.f32.mrf.mxu3 }
  0xd3   : > { %v1087_v51 = vadd.f32 %v1086_v50, %v1074_v49 }
  0xd5   : > { %v1090_v52 = vpack.c.bf16 %v1087_v51, %v1087_v51  ;;  %1312 = vst.msk [vmem:[%s2209_s8] sm:$0x1] %vm1311_vm1, %v1087_v51 }
  0xd7   : > { %1644 = vmatmul.msk.bf16.vlgmr.msra.gmra.mxu0 %vm1121_vm2, %v1090_v52  ;;  %1645 = vmatmul.msk.bf16.vlgmr.msra.gmra.mxu1 %vm1121_vm2, %v1090_v52 }
  0xd8   : > { %v1075_v53 = vpop.f32.mrf.mxu2 }
  0xd9   : > { %v1088_v54 = vpop.f32.mrf.mxu3 }
 0x154   : > { %v1134_v62 = vpop.f32.mrf.mxu0  ;;  %v1147_v63 = vpop.f32.mrf.mxu1 }
 0x155   : > { %v1135_v0 = vadd.f32 %v1134_v62, %v1117_v60  ;;  %v1148_v1 = vadd.f32 %v1147_v63, %v1118_v61 }
 0x157   : > { %v1151_v2 = vmax.f32 %v1135_v0, 0.0  ;;  %v1152_v3 = vmax.f32 %v1148_v1, 0.0 }
 0x159   : > { %v1153_v4 = vpack.c.bf16 %v1151_v2, %v1151_v2  ;;  %v1154_v5 = vpack.c.bf16 %v1152_v3, %v1152_v3 }
 0x15b   : > { %1292 = vmatmul.bf16.vlgmr.msra.gmra.mxu2 %v1153_v4  ;;  %1305 = vmatmul.bf16.vlgmr.msra.gmra.mxu3 %v1154_v5 }
 0x15c   : > { %v1136_v6 = vpop.f32.mrf.mxu0  ;;  %v1149_v7 = vpop.f32.mrf.mxu1 }
 0x1de   : > { %v1293_v9 = vpop.f32.mrf.mxu2  ;;  %v1306_v10 = vpop.f32.mrf.mxu3 }
 0x1df   : > { %v1294_v11 = vadd.f32 %v1293_v9, %v1187_v8 }
 0x1e1   : > { %v1307_v12 = vadd.f32 %v1306_v10, %v1294_v11 }
 0x1e3   : > { %1314 = vrot.lane.b32.xlu0 %v1307_v12, %s1816_s27 }
 0x1e6   : > { %v1295_v13 = vpop.f32.mrf.mxu2  ;;  %v1308_v14 = vpop.f32.mrf.mxu3 }
 0x255   : > { %v1315_v15 = vpop.permute.xlu0 %1314 }
 0x256   : > { %1318 = vst.msk [vmem:[%s2209_s8] sm:$0x1] %vm1317_vm3, %v1315_v15 }
 0x257 PF: > { %s17_s24 = sadd.s32 1, %s1813_s24  }
 0x258   : > { %p14_p4 = scmp.ge.s32.totalorder %s17_s24, 4  }
 0x25a   :  { %16 = sbr.rel (!%p14_p4) target bundleno = 1 (0x1), region = 78 }

</bundles_post_ra>
